<compile_context>
chip_gen: v7x
topology: tpu7x:2x2x1
jax: 0.10.0
libtpu: 0.0.40
codegen_flags: <defaults>
</compile_context>

<pallas_src>
import functools

import jax
import jax.numpy as jnp
from jax import lax
from jax.experimental import pallas as pl
from jax.experimental.pallas import tpu as pltpu

LN_EPS = 1e-5            # nn.LayerNorm default
LEAKY_SLOPE = 0.01       # nn.LeakyReLU default


# ---------------------------------------------------------------------------
# Kernel
# ---------------------------------------------------------------------------
def _res_ff_kernel(x_ref, *refs, has_mask, mm_dtype):
    if has_mask:
        m_ref, w1_ref, b1_ref, w2_ref, b2_ref, g_ref, be_ref, o_ref = refs
    else:
        w1_ref, b1_ref, w2_ref, b2_ref, g_ref, be_ref, o_ref = refs

    x = x_ref[...]                                   # (TR, D) f32

    # linear_in : matmul in mm_dtype (bf16 by default), f32 accumulate
    h = jnp.dot(x.astype(mm_dtype), w1_ref[...],
                preferred_element_type=jnp.float32) + b1_ref[...]
    # LeakyReLU(0.01)
    h = jnp.where(h >= 0.0, h, LEAKY_SLOPE * h)
    # linear_out
    y = jnp.dot(h.astype(mm_dtype), w2_ref[...],
                preferred_element_type=jnp.float32) + b2_ref[...]
    if has_mask:
        # (TR,1) broadcast over features == repeat in the PyTorch reference.
        y = y * m_ref[...]

    # residual + LayerNorm, statistics in f32 (two-pass: avoids E[z^2]-mu^2
    # cancellation; hidden under the HBM-bound DMA anyway).
    z = x + y
    mean = jnp.mean(z, axis=-1, keepdims=True)
    var = jnp.mean((z - mean) ** 2, axis=-1, keepdims=True)
    o_ref[...] = ((z - mean) * lax.rsqrt(var + LN_EPS) * g_ref[...]
                  + be_ref[...]).astype(o_ref.dtype)


# ---------------------------------------------------------------------------
# Helpers
# ---------------------------------------------------------------------------
def _round_up(a, b):
    return pl.cdiv(a, b) * b


def _pick_vmem_limit(tr, D, H):
    """Size the scoped-VMEM limit from the real footprint + device capacity."""
    io = 2 * (tr * D * 4) * 2                  # x + out blocks, double-buffered f32
    msk = 2 * (tr * 128 * 4)                   # (tr,1) mask lane-pads to 128 lanes
    wts = 2 * (D * H) * 2 + (H + 3 * D) * 4    # bf16 weights (1 buffer) + f32 bias/LN
    tmp = tr * H * (4 + 2) + 3 * (tr * D * 4)  # f32 h, bf16 h, z / compiler scratch
    need = io + msk + wts + tmp
    try:
        cap = pltpu.get_tpu_info().vmem_capacity_bytes
    except Exception:
        cap = 64 * 1024 * 1024                 # conservative (v7x per-TC VMEM)
    return int(min(max(2 * need, 32 * 1024 * 1024), int(0.8 * cap)))


# ---------------------------------------------------------------------------
# Wrapper
# ---------------------------------------------------------------------------
@functools.partial(jax.jit,
                   static_argnames=("block_rows", "out_dtype", "fp32_matmul"))
def res_ff(x, params, mask=None, *, block_rows=1024, out_dtype=None,
           fp32_matmul=False):
    """ResFF.forward.  x: (B, L, D), mask: (B, L) or None."""
    B, L, D = x.shape
    H = params["w1"].shape[1]
    rows = B * L
    out_dtype = x.dtype if out_dtype is None else out_dtype
    mm_dtype = jnp.float32 if fp32_matmul else jnp.bfloat16

    x2 = x.reshape(rows, D).astype(jnp.float32)

    # Row tile: multiple of 8 sublanes, big enough to amortize per-step
    # overhead, small enough that the grid keeps >= 8 steps (>=4 per core on
    # v7x megacore) so DMA/compute actually pipeline.  No padding: the grid is
    # cdiv(rows, tr) and Pallas masks the partial tail block on store.
    target_steps = 8
    tr = max(8, min(block_rows, _round_up(pl.cdiv(rows, target_steps), 8)))
    grid = (pl.cdiv(rows, tr),)

    # Weights in mm_dtype (bf16 MXU-native by default, halves weight DMA);
    # biases / LN params stay f32.
    w1 = params["w1"].astype(mm_dtype)
    w2 = params["w2"].astype(mm_dtype)
    b1 = params["b1"].astype(jnp.float32)
    b2 = params["b2"].astype(jnp.float32)
    g = params["ln_g"].astype(jnp.float32)
    be = params["ln_b"].astype(jnp.float32)

    # Constant-index operands: resident across all grid steps, single buffer.
    const = lambda shape: pl.BlockSpec(shape, lambda i: (0, 0),
                                       pipeline_mode=pl.Buffered(1))

    has_mask = mask is not None
    operands = [x2]
    in_specs = [pl.BlockSpec((tr, D), lambda i: (i, 0))]
    if has_mask:
        m2 = mask.reshape(rows, 1).astype(jnp.float32)
        operands.append(m2)
        in_specs.append(pl.BlockSpec((tr, 1), lambda i: (i, 0)))
    operands += [w1, b1, w2, b2, g, be]
    in_specs += [const((D, H)), const((1, H)),        # w1, b1
                 const((H, D)), const((1, D)),        # w2, b2
                 const((1, D)), const((1, D))]        # ln gamma, beta

    out = pl.pallas_call(
        functools.partial(_res_ff_kernel, has_mask=has_mask, mm_dtype=mm_dtype),
        out_shape=jax.ShapeDtypeStruct((rows, D), out_dtype),
        grid=grid,
        in_specs=in_specs,
        out_specs=pl.BlockSpec((tr, D), lambda i: (i, 0)),
        compiler_params=pltpu.CompilerParams(
            dimension_semantics=("parallel",),
            vmem_limit_bytes=_pick_vmem_limit(tr, D, H)),
    )(*operands)

    return out.reshape(B, L, D)


# ---------------------------------------------------------------------------
# Pure-JAX f32 reference (mirrors the PyTorch module)
# ---------------------------------------------------------------------------
def res_ff_ref(x, params, mask=None):
    h = x @ params["w1"] + params["b1"]
    h = jnp.where(h >= 0.0, h, LEAKY_SLOPE * h)
    y = h @ params["w2"] + params["b2"]
    if mask is not None:
        y = y * mask[..., None].astype(x.dtype)
    z = x + y
    mean = jnp.mean(z, -1, keepdims=True)
    var = jnp.mean((z - mean) ** 2, -1, keepdims=True)
    return (z - mean) * lax.rsqrt(var + LN_EPS) * params["ln_g"] + params["ln_b"]


# ---------------------------------------------------------------------------
# Deterministic parameter init (nn.Linear / nn.LayerNorm defaults)
# ---------------------------------------------------------------------------
def init_params(key, in_dims, hid_dims):
    def lin(k, fan_in, fan_out):
        k1, k2 = jax.random.split(k)
        lim = 1.0 / (fan_in ** 0.5)
        w = jax.random.uniform(k1, (fan_in, fan_out), jnp.float32, -lim, lim)
        b = jax.random.uniform(k2, (1, fan_out), jnp.float32, -lim, lim)
        return w, b

    k1, k2 = jax.random.split(key)
    w1, b1 = lin(k1, in_dims, hid_dims)
    w2, b2 = lin(k2, hid_dims, in_dims)
    return dict(w1=w1, b1=b1, w2=w2, b2=b2,
                ln_g=jnp.ones((1, in_dims), jnp.float32),
                ln_b=jnp.zeros((1, in_dims), jnp.float32))


if __name__ == "__main__":
    # Small but lane-dense shapes: D and hid multiples of 128.
    B, L, D, H = 4, 128, 128, 256

    root = jax.random.PRNGKey(0)
    kx, km, kp = jax.random.split(root, 3)
    x = jax.random.normal(kx, (B, L, D), jnp.float32)
    # Padding-style mask: 1 for valid positions, 0 for padded tail.
    lengths = jnp.array([L, L - 7, L // 2, 3], jnp.int32)
    mask = (jnp.arange(L)[None, :] < lengths[:, None]).astype(jnp.float32)
    params = init_params(kp, D, H)

    out = jax.block_until_ready(res_ff(x, params, mask))
    ref = res_ff_ref(x, params, mask)

    assert out.shape == (B, L, D), out.shape
    assert bool(jnp.all(jnp.isfinite(out)))
    # bf16 matmuls with f32 accumulation -> loose tolerance vs f32 reference.
    err = float(jnp.max(jnp.abs(out - ref)))
    assert err < 1e-1, f"max abs err {err}"

    # Also exercise the mask=None path (compiled without the mask operand).
    out2 = jax.block_until_ready(res_ff(x, params, None))
    assert out2.shape == (B, L, D)
    assert bool(jnp.all(jnp.isfinite(out2)))

    print("KERNEL_OK")
</pallas_src>

<mosaic_0001>
module attributes {stable_mosaic.version = 11 : i64} {
  func.func @_res_ff_kernel(%arg0: i32, %arg1: memref<64x128xf32, #tpu.memory_space<vmem>>, %arg2: memref<64x1xf32, #tpu.memory_space<vmem>>, %arg3: memref<128x256xbf16, #tpu.memory_space<vmem>>, %arg4: memref<1x256xf32, #tpu.memory_space<vmem>>, %arg5: memref<256x128xbf16, #tpu.memory_space<vmem>>, %arg6: memref<1x128xf32, #tpu.memory_space<vmem>>, %arg7: memref<1x128xf32, #tpu.memory_space<vmem>>, %arg8: memref<1x128xf32, #tpu.memory_space<vmem>>, %arg9: memref<64x128xf32, #tpu.memory_space<vmem>>) attributes {dimension_semantics = [#tpu.dimension_semantics<parallel>], iteration_bounds = array<i64: 8>, scalar_prefetch = 0 : i64, scratch_operands = 0 : i64, tpu.core_type = #tpu.core_type<tc>, window_params = [{transform_indices = @transform_0, window_bounds = array<i64: 64, 128>}, {transform_indices = @transform_1, window_bounds = array<i64: 64, 1>}, {pipeline_mode = #tpu.pipeline_mode<synchronous>, transform_indices = @transform_2, window_bounds = array<i64: 128, 256>}, {pipeline_mode = #tpu.pipeline_mode<synchronous>, transform_indices = @transform_3, window_bounds = array<i64: 1, 256>}, {pipeline_mode = #tpu.pipeline_mode<synchronous>, transform_indices = @transform_4, window_bounds = array<i64: 256, 128>}, {pipeline_mode = #tpu.pipeline_mode<synchronous>, transform_indices = @transform_5, window_bounds = array<i64: 1, 128>}, {pipeline_mode = #tpu.pipeline_mode<synchronous>, transform_indices = @transform_6, window_bounds = array<i64: 1, 128>}, {pipeline_mode = #tpu.pipeline_mode<synchronous>, transform_indices = @transform_7, window_bounds = array<i64: 1, 128>}, {transform_indices = @transform_8, window_bounds = array<i64: 64, 128>}]} {
    %c0 = arith.constant 0 : index
    %c0_0 = arith.constant 0 : index
    %0 = vector.load %arg1[%c0, %c0_0] : memref<64x128xf32, #tpu.memory_space<vmem>>, vector<64x128xf32>
    %1 = arith.truncf %0 : vector<64x128xf32> to vector<64x128xbf16>
    %c0_1 = arith.constant 0 : index
    %c0_2 = arith.constant 0 : index
    %2 = vector.load %arg3[%c0_1, %c0_2] : memref<128x256xbf16, #tpu.memory_space<vmem>>, vector<128x256xbf16>
    %cst = arith.constant dense<0.000000e+00> : vector<64x256xf32>
    %3 = tpu.matmul %1, %2, %cst {dimension_numbers = #tpu.dot_dimension_numbers<[1], [0], [0], [1], [0, 0, 1, 1], [], []>} : vector<64x128xbf16>, vector<128x256xbf16>, vector<64x256xf32> -> vector<64x256xf32>
    %c0_3 = arith.constant 0 : index
    %c0_4 = arith.constant 0 : index
    %4 = vector.load %arg4[%c0_3, %c0_4] : memref<1x256xf32, #tpu.memory_space<vmem>>, vector<1x256xf32>
    %5 = vector.broadcast %4 : vector<1x256xf32> to vector<64x256xf32>
    %6 = arith.addf %3, %5 : vector<64x256xf32>
    %cst_5 = arith.constant 0.000000e+00 : f32
    %7 = vector.broadcast %cst_5 : f32 to vector<64x256xf32>
    %8 = arith.cmpf oge, %6, %7 : vector<64x256xf32>
    %cst_6 = arith.constant 0.00999999977 : f32
    %9 = vector.broadcast %cst_6 : f32 to vector<64x256xf32>
    %10 = arith.mulf %9, %6 : vector<64x256xf32>
    %11 = arith.select %8, %6, %10 : vector<64x256xi1>, vector<64x256xf32>
    %12 = arith.truncf %11 : vector<64x256xf32> to vector<64x256xbf16>
    %c0_7 = arith.constant 0 : index
    %c0_8 = arith.constant 0 : index
    %13 = vector.load %arg5[%c0_7, %c0_8] : memref<256x128xbf16, #tpu.memory_space<vmem>>, vector<256x128xbf16>
    %cst_9 = arith.constant dense<0.000000e+00> : vector<64x128xf32>
    %14 = tpu.matmul %12, %13, %cst_9 {dimension_numbers = #tpu.dot_dimension_numbers<[1], [0], [0], [1], [0, 0, 1, 1], [], []>} : vector<64x256xbf16>, vector<256x128xbf16>, vector<64x128xf32> -> vector<64x128xf32>
    %c0_10 = arith.constant 0 : index
    %c0_11 = arith.constant 0 : index
    %15 = vector.load %arg6[%c0_10, %c0_11] : memref<1x128xf32, #tpu.memory_space<vmem>>, vector<1x128xf32>
    %16 = vector.broadcast %15 : vector<1x128xf32> to vector<64x128xf32>
    %17 = arith.addf %14, %16 : vector<64x128xf32>
    %c0_12 = arith.constant 0 : index
    %c0_13 = arith.constant 0 : index
    %18 = vector.load %arg2[%c0_12, %c0_13] : memref<64x1xf32, #tpu.memory_space<vmem>>, vector<64x1xf32>
    %19 = vector.broadcast %18 : vector<64x1xf32> to vector<64x128xf32>
    %20 = arith.mulf %17, %19 : vector<64x128xf32>
    %21 = arith.addf %0, %20 : vector<64x128xf32>
    %cst_14 = arith.constant dense<0.000000e+00> : vector<64xf32>
    %22 = vector.multi_reduction <add>, %21, %cst_14 [1] : vector<64x128xf32> to vector<64xf32>
    %23 = vector.shape_cast %22 : vector<64xf32> to vector<64x1xf32>
    %cst_15 = arith.constant 1.280000e+02 : f32
    %24 = vector.broadcast %cst_15 : f32 to vector<64x1xf32>
    %25 = arith.divf %23, %24 : vector<64x1xf32>
    %26 = vector.broadcast %25 : vector<64x1xf32> to vector<64x128xf32>
    %27 = arith.subf %21, %26 : vector<64x128xf32>
    %28 = arith.mulf %27, %27 : vector<64x128xf32>
    %cst_16 = arith.constant dense<0.000000e+00> : vector<64xf32>
    %29 = vector.multi_reduction <add>, %28, %cst_16 [1] : vector<64x128xf32> to vector<64xf32>
    %30 = vector.shape_cast %29 : vector<64xf32> to vector<64x1xf32>
    %cst_17 = arith.constant 1.280000e+02 : f32
    %31 = vector.broadcast %cst_17 : f32 to vector<64x1xf32>
    %32 = arith.divf %30, %31 : vector<64x1xf32>
    %33 = vector.broadcast %25 : vector<64x1xf32> to vector<64x128xf32>
    %34 = arith.subf %21, %33 : vector<64x128xf32>
    %cst_18 = arith.constant 9.99999974E-6 : f32
    %35 = vector.broadcast %cst_18 : f32 to vector<64x1xf32>
    %36 = arith.addf %32, %35 : vector<64x1xf32>
    %37 = math.rsqrt %36 : vector<64x1xf32>
    %38 = vector.broadcast %37 : vector<64x1xf32> to vector<64x128xf32>
    %39 = arith.mulf %34, %38 : vector<64x128xf32>
    %c0_19 = arith.constant 0 : index
    %c0_20 = arith.constant 0 : index
    %40 = vector.load %arg7[%c0_19, %c0_20] : memref<1x128xf32, #tpu.memory_space<vmem>>, vector<1x128xf32>
    %41 = vector.broadcast %40 : vector<1x128xf32> to vector<64x128xf32>
    %42 = arith.mulf %39, %41 : vector<64x128xf32>
    %c0_21 = arith.constant 0 : index
    %c0_22 = arith.constant 0 : index
    %43 = vector.load %arg8[%c0_21, %c0_22] : memref<1x128xf32, #tpu.memory_space<vmem>>, vector<1x128xf32>
    %44 = vector.broadcast %43 : vector<1x128xf32> to vector<64x128xf32>
    %45 = arith.addf %42, %44 : vector<64x128xf32>
    %c0_23 = arith.constant 0 : index
    %c0_24 = arith.constant 0 : index
    %46 = vector.load %arg9[%c0_23, %c0_24] : memref<64x128xf32, #tpu.memory_space<vmem>>, vector<64x128xf32>
    tpu.vector_store %arg9[%c0_23, %c0_24], %45 {strides = array<i32>} : memref<64x128xf32, #tpu.memory_space<vmem>>, vector<64x128xf32>,
    return
  }
  func.func @transform_0(%arg0: i32) -> (i32, i32) {
    %c0_i32 = arith.constant 0 : i32
    %c0_i32_0 = arith.constant 0 : i32
    return %arg0, %c0_i32 : i32, i32
  }
  func.func @transform_1(%arg0: i32) -> (i32, i32) {
    %c0_i32 = arith.constant 0 : i32
    %c0_i32_0 = arith.constant 0 : i32
    return %arg0, %c0_i32 : i32, i32
  }
  func.func @transform_2(%arg0: i32) -> (i32, i32) {
    %c0_i32 = arith.constant 0 : i32
    %c0_i32_0 = arith.constant 0 : i32
    %c0_i32_1 = arith.constant 0 : i32
    return %c0_i32, %c0_i32_0 : i32, i32
  }
  func.func @transform_3(%arg0: i32) -> (i32, i32) {
    %c0_i32 = arith.constant 0 : i32
    %c0_i32_0 = arith.constant 0 : i32
    %c0_i32_1 = arith.constant 0 : i32
    return %c0_i32, %c0_i32_0 : i32, i32
  }
  func.func @transform_4(%arg0: i32) -> (i32, i32) {
    %c0_i32 = arith.constant 0 : i32
    %c0_i32_0 = arith.constant 0 : i32
    %c0_i32_1 = arith.constant 0 : i32
    return %c0_i32, %c0_i32_0 : i32, i32
  }
  func.func @transform_5(%arg0: i32) -> (i32, i32) {
    %c0_i32 = arith.constant 0 : i32
    %c0_i32_0 = arith.constant 0 : i32
    %c0_i32_1 = arith.constant 0 : i32
    return %c0_i32, %c0_i32_0 : i32, i32
  }
  func.func @transform_6(%arg0: i32) -> (i32, i32) {
    %c0_i32 = arith.constant 0 : i32
    %c0_i32_0 = arith.constant 0 : i32
    %c0_i32_1 = arith.constant 0 : i32
    return %c0_i32, %c0_i32_0 : i32, i32
  }
  func.func @transform_7(%arg0: i32) -> (i32, i32) {
    %c0_i32 = arith.constant 0 : i32
    %c0_i32_0 = arith.constant 0 : i32
    %c0_i32_1 = arith.constant 0 : i32
    return %c0_i32, %c0_i32_0 : i32, i32
  }
  func.func @transform_8(%arg0: i32) -> (i32, i32) {
    %c0_i32 = arith.constant 0 : i32
    %c0_i32_0 = arith.constant 0 : i32
    return %arg0, %c0_i32 : i32, i32
  }
}

</mosaic_0001>

<bundles_post_ra>
// kernel: res_ff.1
= control target key start
LH: loop header
LB: loop body
LE: loop exit
PB: predicated region body
PF: predicated region fallthrough
CT: control target
= control target key end

     0   :  { %13 = vsyncpa [#allocation3], 0  ;;  %s1694_s0 = inlined_call_operand.vmem [shape: f32[512,128], index: 0, kind: input, shape index: {}]   ;;  %s1695_s1 = inlined_call_operand.vmem [shape: f32[512,1], index: 1, kind: input, shape index: {}]   ;;  %s1696_s2 = inlined_call_operand.vmem [shape: bf16[128,256], index: 2, kind: input, shape index: {}]   ;;  %s1697_s3 = inlined_call_operand.vmem [shape: f32[1,256], index: 3, kind: input, shape index: {}]   ;;  %s1698_s4 = inlined_call_operand.vmem [shape: bf16[256,128], index: 4, kind: input, shape index: {}]   ;;  %s1699_s5 = inlined_call_operand.vmem [shape: f32[1,128], index: 5, kind: input, shape index: {}]   ;;  %s1700_s6 = inlined_call_operand.vmem [shape: f32[1,128], index: 6, kind: input, shape index: {}]   ;;  %s1701_s7 = inlined_call_operand.vmem [shape: f32[1,128], index: 7, kind: input, shape index: {}]   ;;  %s1702_s8 = inlined_call_operand.hbm [shape: f32[512,128], index: 8, kind: output, shape index: {}]  }
   0x1   :  { %15 = vsyncpa [#allocation3 + $0x1], 0  ;;  %s1361_s27 = smov 0   ;;  %s1363_s28 = smov 0  }
   0x2   :  { %s1365_s29 = smov 0   ;;  %s1367_s30 = smov 0  }
   0x3 LB: > { %s1382_s9 = sadd.s32 4294967295, %s1310_s30   ;;  %s1058_s10 = sadd.s32 4294967294, %s1310_s30   ;;  %s1310_s30 = sphi %s1367_s30, %s1708_s30   ;;  %s1306_s29 = sphi %s1365_s29, %s1707_s29   ;;  %s1302_s28 = sphi %s1363_s28, %s1706_s28   ;;  %s1298_s27 = sphi %s1361_s27, %s1705_s27  }
   0x4   : > { %s1386_s11 = sadd.s32 1, %s1310_s30   ;;  %s206_s12 = sadd.s32 1, %s1306_s29 }
   0x5   : > { %s203_s13 = ssub.s32 %s1310_s30, %s1386_s11  ;;  %p216_p0 = scmp.ne.s32.totalorder %s1306_s29, %s1302_s28 }
   0x6   : > { %p204_p1 = scmp.eq.s32.totalorder %s203_s13, 0  ;;  %p217_p2 = scmp.eq.s32.totalorder %s1382_s9, 7 }
   0x7   : > { %p222_p3 = scmp.ne.s32.totalorder %s1302_s28, %s1298_s27  ;;  %p223_p4 = scmp.eq.s32.totalorder %s1058_s10, 7 }
   0x8   : > { %s1397_s14 = scalar_select %p204_p1, %s1306_s29, %s206_s12  }
   0x9   : > { %p1399_p5 = por %p217_p2, %p216_p0  ;;  %p1403_p6 = por %p223_p4, %p222_p3 }
   0xa   : > { %p1061_p7 = scmp.ge.s32.totalorder %s1310_s30, 1  ;;  %p277_p8 = scmp.lt.s32.totalorder %s1310_s30, 9 }
   0xc   : > { %p278_p9 = pnand %p1061_p7, %p277_p8 }
   0xd   : > { %v1192_v0 = vld [vmem:[%s1696_s2 + $0x4] ss:$8 sps:$4 sm:$0xff] (!%p278_p9)   ;;  %v1194_v1 = vld [vmem:[%s1696_s2] ss:$8 sps:$4 sm:$0xff] (!%p278_p9)   ;;  %v1312_v2 = vmov (!%p278_p9), 0   ;;  %s1063_s13 = sshll.u32 (!%p278_p9), %s1382_s9, 3  ;;  %v360_v53 = vlaneseq (!%p278_p9) }
   0xe   : > { %281 = sbr.rel (%p278_p9) target bundleno = 843 (0x34b), region = 52  ;;  %482 = vmatprep.mubr.bf16.mxu0 (!%p278_p9), %v1312_v2  ;;  %1190 = vset.pattern.permute.xlu0 (!%p278_p9), %v1312_v2  ;;  %v1195_v3 = vld [vmem:[%s1696_s2 + $0x14] ss:$8 sps:$4 sm:$0xff] (!%p278_p9)   ;;  %v1197_v4 = vld [vmem:[%s1696_s2 + $0x10] ss:$8 sps:$4 sm:$0xff] (!%p278_p9)   ;;  %p317_p10 = scmp.lt.s32.totalorder (!%p278_p9), %s1063_s13, 63 }
   0xf   : > { %450 = vmatprep.subr.bf16.mxu0 (!%p278_p9), %v1192_v0  ;;  %1191 = vset.pattern.permute.xlu1 (!%p278_p9), %v1312_v2  ;;  %v1198_v5 = vld [vmem:[%s1696_s2 + $0x24] ss:$8 sps:$4 sm:$0xff] (!%p278_p9)   ;;  %v1200_v6 = vld [vmem:[%s1696_s2 + $0x20] ss:$8 sps:$4 sm:$0xff] (!%p278_p9)   ;;  %v1201_v7 = vld [vmem:[%s1696_s2 + $0x34] ss:$8 sps:$4 sm:$0xff] (!%p278_p9)  }
  0x10   : > { %451 = vmatpush1.bf16.msra.mxu0 (!%p278_p9), %v1194_v1  ;;  %v1203_v8 = vld [vmem:[%s1696_s2 + $0x30] ss:$8 sps:$4 sm:$0xff] (!%p278_p9)   ;;  %v1204_v9 = vld [vmem:[%s1696_s2 + $0x44] ss:$8 sps:$4 sm:$0xff] (!%p278_p9)   ;;  %v1206_v10 = vld [vmem:[%s1696_s2 + $0x40] ss:$8 sps:$4 sm:$0xff] (!%p278_p9)  }
  0x11   : > { %452 = vmatprep.subr.bf16.mxu0 (!%p278_p9), %v1195_v3  ;;  %v1207_v11 = vld [vmem:[%s1696_s2 + $0x54] ss:$8 sps:$4 sm:$0xff] (!%p278_p9)   ;;  %v1216_v12 = vld [vmem:[%s1698_s4 + $0x40] sm:$0xff] (!%p278_p9)   ;;  %v1218_v14 = vld [vmem:[%s1698_s4 + $0x48] sm:$0xff] (!%p278_p9)   ;;  %v361_v54 = vshrl.u32 (!%p278_p9), %v360_v53, 7  ;;  %s1107_s18 = sshll.u32 (!%p278_p9), %s1382_s9, 10 }
  0x12   : > { %v1217_v13 = vld [vmem:[%s1698_s4] sm:$0xff] (!%p278_p9)   ;;  %1108 = vmatprep.subr.bf16.mxu1 (!%p278_p9), %v1216_v12  ;;  %v1219_v15 = vld [vmem:[%s1698_s4 + $0x8] sm:$0xff] (!%p278_p9)   ;;  %v1220_v16 = vld [vmem:[%s1698_s4 + $0x50] sm:$0xff] (!%p278_p9)   ;;  %s1645_s20 = scalar_lea.hbm (!%p278_p9), %s1702_s8, %s1107_s18  ;;  %s1313_s22 = smov (!%p278_p9), [#allocation2]  }
  0x13   : > { %1109 = vmatpush3.bf16.msra.mxu1 (!%p278_p9), %v1217_v13  ;;  %v1209_v17 = vld [vmem:[%s1696_s2 + $0x50] ss:$8 sps:$4 sm:$0xff] (!%p278_p9)   ;;  %v1210_v18 = vld [vmem:[%s1696_s2 + $0x64] ss:$8 sps:$4 sm:$0xff] (!%p278_p9)   ;;  %v1212_v19 = vld [vmem:[%s1696_s2 + $0x60] ss:$8 sps:$4 sm:$0xff] (!%p278_p9)  }
  0x14   : > { %453 = vmatpush1.bf16.msra.mxu0 (!%p278_p9), %v1197_v4  ;;  %1110 = vmatprep.subr.bf16.mxu1 (!%p278_p9), %v1218_v14  ;;  %v1221_v20 = vld [vmem:[%s1698_s4 + $0x10] sm:$0xff] (!%p278_p9)   ;;  %v1222_v21 = vld [vmem:[%s1698_s4 + $0x58] sm:$0xff] (!%p278_p9)   ;;  %v1224_v24 = vld [vmem:[%s1698_s4 + $0x60] sm:$0xff] (!%p278_p9)   ;;  %v362_v55 = vsub.s32 (!%p278_p9), 0, %v361_v54  ;;  %v366_v57 = vsub.s32 (!%p278_p9), 1, %v361_v54  ;;  %s1252_s24 = sshll.u32 (!%p278_p9), %s1313_s22, 4  ;;  %s1253_s24 = int_to_ptr.vmem [resolvable:$false] %s1252_s24 }
  0x15   : > { %454 = vmatprep.subr.bf16.mxu0 %v1198_v5  ;;  %s1710_s13 = smov (!%p317_p10, %s1063_s13), 63  ;;  %v1213_v22 = vld [vmem:[%s1696_s2 + $0x74] ss:$8 sps:$4 sm:$0xff]   ;;  %v1215_v25 = vld [vmem:[%s1696_s2 + $0x70] ss:$8 sps:$4 sm:$0xff]   ;;  %v1225_v28 = vld [vmem:[%s1698_s4 + $0x20] sm:$0xff]  }
  0x16   : > { %s1064_s23 = sshll.u32 %s1710_s13, 3  ;;  %v1223_v23 = vld [vmem:[%s1698_s4 + $0x18] sm:$0xff]   ;;  %v1226_v39 = vld [vmem:[%s1698_s4 + $0x68] sm:$0xff]   ;;  %v1228_v41 = vld [vmem:[%s1698_s4 + $0x70] sm:$0xff]  }
  0x17   : > { %1111 = vmatpush3.bf16.msra.mxu1 %v1219_v15  ;;  %s1481_s25 = scalar_lea.vmem %s1694_s0, %s1064_s23  ;;  %v1227_v40 = vld [vmem:[%s1698_s4 + $0x28] sm:$0xff]   ;;  %v1229_v42 = vld [vmem:[%s1698_s4 + $0x30] sm:$0xff]   ;;  %v1230_v43 = vld [vmem:[%s1698_s4 + $0x78] sm:$0xff]   ;;  %s326_s19 = scalar_lea.vmem %s1695_s1, %s1064_s23 }
  0x18   : > { %455 = vmatpush1.bf16.msra.mxu0 %v1200_v6  ;;  %1112 = vmatprep.subr.bf16.mxu1 %v1220_v16  ;;  %v1499_v26 = vld [vmem:[%s1481_s25] sm:$0xff]  ;;  %v1502_v27 = vld [vmem:[%s1481_s25 + $0x8] sm:$0xff]  ;;  %v1511_v30 = vld [vmem:[%s1481_s25 + $0x10] sm:$0xff] }
  0x19   : > { %456 = vmatprep.subr.bf16.mxu0 %v1201_v7  ;;  %v338_v29 = vpack.c.bf16 %v1502_v27, %v1499_v26  ;;  %v1514_v31 = vld [vmem:[%s1481_s25 + $0x18] sm:$0xff]  ;;  %v1520_v33 = vld [vmem:[%s1481_s25 + $0x20] sm:$0xff]  ;;  %v1523_v34 = vld [vmem:[%s1481_s25 + $0x28] sm:$0xff] }
  0x1a   : > { %v339_v32 = vpack.c.bf16 %v1514_v31, %v1511_v30  ;;  %v340_v35 = vpack.c.bf16 %v1523_v34, %v1520_v33  ;;  %v1529_v36 = vld [vmem:[%s1481_s25 + $0x30] sm:$0xff]  ;;  %v1532_v37 = vld [vmem:[%s1481_s25 + $0x38] sm:$0xff]  ;;  %v779_v45 = vld [vmem:[%s326_s19] sm:$0xff]  ;;  %s313_s25 = sand.u32 1, %s1302_s28  }
  0x1b   : > { %1113 = vmatpush3.bf16.msra.mxu1 %v1221_v20  ;;  %v341_v38 = vpack.c.bf16 %v1532_v37, %v1529_v36  ;;  %v1231_v44 = vld [vmem:[%s1698_s4 + $0x38] sm:$0xff]   ;;  %v781_v46 = vld [vmem:[%s326_s19 + $0x10] sm:$0xff]  ;;  %789 = vperm.xlu0 %1190, %v779_v45   ;;  %v780_v47 = vld [vmem:[%s326_s19 + $0x8] sm:$0xff]  ;;  %s1062_s26 = sshll.u32 %s313_s25, 6  ;;  %s1653_s21 = scalar_lea.sflag [#allocation3], %s313_s25 }
  0x1c   : > { %457 = vmatpush1.bf16.msra.mxu0 %v1203_v8  ;;  %1114 = vmatprep.subr.bf16.mxu1 %v1222_v21  ;;  %v782_v48 = vld [vmem:[%s326_s19 + $0x18] sm:$0xff]  ;;  %v783_v49 = vld [vmem:[%s326_s19 + $0x20] sm:$0xff]  ;;  %v784_v50 = vld [vmem:[%s326_s19 + $0x28] sm:$0xff]  ;;  %s1626_s17 = scalar_lea.vmem [#allocation2], %s1062_s26  ;;  %s1254_s26 = scalar_lea.vmem %s1253_s24, 2048 }
  0x1d   : > { %458 = vmatprep.subr.bf16.mxu0 %v1204_v9  ;;  %799 = vperm.xlu1 %1191, %v781_v46   ;;  %v785_v51 = vld [vmem:[%s326_s19 + $0x30] sm:$0xff]  ;;  %v786_v52 = vld [vmem:[%s326_s19 + $0x38] sm:$0xff]  ;;  %v358_v56 = vld [vmem:[%s1697_s3] sm:$0x3]  ;;  %s984_s19 = sshll.u32 %s1626_s17, 4  ;;  %s1647_s19 = int_to_ptr.vmem [resolvable:$true] %s984_s19 }
  0x1e   : > { %v1562_v58 = vrot.slane %v358_v56, %v362_v55  ;;  %v1564_v59 = vrot.slane %v358_v56, %v366_v57  ;;  %s1248_s9 = scalar_lea.vmem %s1647_s19, 1024  ;;  %p1255_p0 = scmp.lt.s32.totalorder %s1647_s19, %s1253_s24 }
  0x1f   : > { %1115 = vmatpush3.bf16.msra.mxu1 %v1223_v23  ;;  %794 = vperm.xlu0 %1190, %v780_v47   ;;  %p1249_p11 = scmp.ne.s32.totalorder %s1647_s19, %s1248_s9  ;;  %p1256_p1 = scmp.lt.s32.totalorder %s1254_s26, %s1248_s9 }
  0x20   : > { %459 = vmatpush1.bf16.msra.mxu0 %v1206_v10  ;;  %1116 = vmatprep.subr.bf16.mxu1 %v1224_v24 }
  0x21   : > { %460 = vmatprep.subr.bf16.mxu0 %v1207_v11  ;;  %804 = vperm.xlu1 %1191, %v782_v48   ;;  %p1250_p12 = pnand %p1249_p11, %p1399_p5  ;;  %p1257_p2 = por %p1256_p1, %p1255_p0 }
  0x23   : > { %1117 = vmatpush3.bf16.msra.mxu1 %v1225_v28  ;;  %809 = vperm.xlu0 %1190, %v783_v49   ;;  %p1251_p13 = pneg %p1250_p12 }
  0x24   : > { %461 = vmatpush1.bf16.msra.mxu0 %v1209_v17  ;;  %1118 = vmatprep.subr.bf16.mxu1 %v1226_v39 }
  0x25   : > { %462 = vmatprep.subr.bf16.mxu0 %v1210_v18  ;;  %814 = vperm.xlu1 %1191, %v784_v50   ;;  %p1258_p3 = pnand %p1257_p2, %p1251_p13 }
  0x27   : > { %1119 = vmatpush3.bf16.msra.mxu1 %v1227_v40  ;;  %819 = vperm.xlu0 %1190, %v785_v51  }
  0x28   : > { %463 = vmatpush1.bf16.msra.mxu0 %v1212_v19  ;;  %1120 = vmatprep.subr.bf16.mxu1 %v1228_v41 }
  0x29   : > { %464 = vmatprep.subr.bf16.mxu0 %v1213_v22  ;;  %824 = vperm.xlu1 %1191, %v786_v52  }
  0x2b   : > { %1121 = vmatpush3.bf16.msra.mxu1 %v1229_v42 }
  0x2c   : > { %465 = vmatpush1.bf16.msra.mxu0 %v1215_v25  ;;  %1122 = vmatprep.subr.bf16.mxu1 %v1230_v43 }
  0x2f   : > { %483 = vmatmul.mubr.bf16.vlgmr.msra.gmra.mrb[0].mxu0 %v338_v29  ;;  %1123 = vmatpush3.bf16.msra.mxu1 %v1231_v44 }
  0x30   : > { %492 = vmatprep.mubr.bf16.mxu0 %v1312_v2 }
  0x37   : > { %493 = vmatmul.mubr.bf16.gmra.mrb[4].mxu0 %v339_v32 }
  0x38   : > { %502 = vmatprep.mubr.bf16.mxu0 %v1312_v2 }
  0x3f   : > { %503 = vmatmul.mubr.bf16.gmra.mrb[8].mxu0 %v340_v35 }
  0x40   : > { %512 = vmatprep.mubr.bf16.mxu0 %v1312_v2 }
  0x47   : > { %513 = vmatmul.mubr.bf16.gmra.mrb[12].mxu0 %v341_v38 }
 0x102   : > { %v484_v60 = vpop.f32.mrb[0].mxu0 }
 0x103   : > { %v485_v61 = vadd.f32 %v484_v60, %v1562_v58  ;;  %v486_v62 = vpop.f32.mrb[1].mxu0 }
 0x104   : > { %v487_v63 = vadd.f32 %v486_v62, %v1564_v59  ;;  %v488_v0 = vpop.f32.mrb[2].mxu0 }
 0x105   : > { %v539_v1 = vmul.f32 0.01, %v485_v61  ;;  %v489_v2 = vadd.f32 %v488_v0, %v1562_v58  ;;  %v490_v3 = vpop.f32.mrb[3].mxu0  ;;  %vm523_vm0 = vcmp.ge.f32.partialorder %v485_v61, 0.0 }
 0x106   : > { %v540_v4 = vmul.f32 0.01, %v487_v63  ;;  %v491_v5 = vadd.f32 %v490_v3, %v1564_v59  ;;  %vm524_vm2 = vcmp.ge.f32.partialorder %v487_v63, 0.0 }
 0x107   : > { %vm525_vm1 = vcmp.ge.f32.partialorder %v489_v2, 0.0  ;;  %v541_v6 = vmul.f32 0.01, %v489_v2  ;;  %v555_v8 = vsel %vm523_vm0, %v485_v61, %v539_v1 }
 0x108   : > { %v542_v7 = vmul.f32 0.01, %v491_v5  ;;  %vm526_vm3 = vcmp.ge.f32.partialorder %v491_v5, 0.0  ;;  %v556_v11 = vsel %vm524_vm2, %v487_v63, %v540_v4 }
 0x109   : > { %v557_v9 = vsel %vm525_vm1, %v489_v2, %v541_v6 }
 0x10a   : > { %v494_v10 = vpop.f32.mrb[4].mxu0  ;;  %v558_v12 = vsel %vm526_vm3, %v491_v5, %v542_v7  ;;  %v571_v13 = vpack.c.bf16 %v557_v9, %v555_v8 }
 0x10b   : > { %v495_v14 = vadd.f32 %v494_v10, %v1562_v58  ;;  %v496_v15 = vpop.f32.mrb[5].mxu0  ;;  %v572_v16 = vpack.c.bf16 %v558_v12, %v556_v11 }
 0x10c   : > { %v497_v17 = vadd.f32 %v496_v15, %v1564_v59  ;;  %v498_v18 = vpop.f32.mrb[6].mxu0 }
 0x10d   : > { %v543_v19 = vmul.f32 0.01, %v495_v14  ;;  %v499_v20 = vadd.f32 %v498_v18, %v1562_v58  ;;  %v500_v21 = vpop.f32.mrb[7].mxu0  ;;  %746 = vmatprep.mubr.bf16.mxu1 %v572_v16  ;;  %vm527_vm4 = vcmp.ge.f32.partialorder %v495_v14, 0.0 }
 0x10e   : > { %v544_v22 = vmul.f32 0.01, %v497_v17  ;;  %v501_v23 = vadd.f32 %v500_v21, %v1564_v59  ;;  %747 = vmatmul.mubr.bf16.vlgmr.msra.gmra.mrb[0].mxu1 %v571_v13  ;;  %vm528_vm5 = vcmp.ge.f32.partialorder %v497_v17, 0.0 }
 0x10f   : > { %vm529_vm6 = vcmp.ge.f32.partialorder %v499_v20, 0.0  ;;  %v545_v24 = vmul.f32 0.01, %v499_v20  ;;  %v559_v28 = vsel %vm527_vm4, %v495_v14, %v543_v19 }
 0x110   : > { %vm530_vm7 = vcmp.ge.f32.partialorder %v501_v23, 0.0  ;;  %v546_v25 = vmul.f32 0.01, %v501_v23  ;;  %v560_v35 = vsel %vm528_vm5, %v497_v17, %v544_v22 }
 0x111   : > { %v561_v29 = vsel %vm529_vm6, %v499_v20, %v545_v24 }
 0x112   : > { %v504_v32 = vpop.f32.mrb[8].mxu0  ;;  %v562_v38 = vsel %vm530_vm7, %v501_v23, %v546_v25  ;;  %v573_v39 = vpack.c.bf16 %v561_v29, %v559_v28  ;;  %v800_v29 = vpop.permute.xlu1 %799 }
 0x113   : > { %v505_v40 = vadd.f32 %v504_v32, %v1562_v58  ;;  %v506_v41 = vpop.f32.mrb[9].mxu0  ;;  %v574_v42 = vpack.c.bf16 %v562_v38, %v560_v35 }
 0x114   : > { %v507_v43 = vadd.f32 %v506_v41, %v1564_v59  ;;  %v508_v44 = vpop.f32.mrb[10].mxu0 }
 0x115   : > { %v547_v45 = vmul.f32 0.01, %v505_v40  ;;  %v509_v46 = vadd.f32 %v508_v44, %v1562_v58  ;;  %v510_v47 = vpop.f32.mrb[11].mxu0  ;;  %754 = vmatprep.mubr.bf16.mxu1 %v574_v42  ;;  %vm531_vm8 = vcmp.ge.f32.partialorder %v505_v40, 0.0 }
 0x116   : > { %v548_v48 = vmul.f32 0.01, %v507_v43  ;;  %v511_v49 = vadd.f32 %v510_v47, %v1564_v59  ;;  %755 = vmatmul.mubr.bf16.gmra.mrb[4].mxu1 %v573_v39  ;;  %vm532_vm9 = vcmp.ge.f32.partialorder %v507_v43, 0.0 }
 0x117   : > { %vm533_vm10 = vcmp.ge.f32.partialorder %v509_v46, 0.0  ;;  %v549_v50 = vmul.f32 0.01, %v509_v46  ;;  %v563_v52 = vsel %vm531_vm8, %v505_v40, %v547_v45  ;;  %v805_v45 = vpop.permute.xlu1 %804 }
 0x118   : > { %vm534_vm11 = vcmp.ge.f32.partialorder %v511_v49, 0.0  ;;  %v550_v51 = vmul.f32 0.01, %v511_v49  ;;  %v564_v55 = vsel %vm532_vm9, %v507_v43, %v548_v48 }
 0x119   : > { %v565_v53 = vsel %vm533_vm10, %v509_v46, %v549_v50 }
 0x11a   : > { %v514_v54 = vpop.f32.mrb[12].mxu0  ;;  %v566_v56 = vsel %vm534_vm11, %v511_v49, %v550_v51  ;;  %v575_v57 = vpack.c.bf16 %v565_v53, %v563_v52 }
 0x11b   : > { %v515_v60 = vadd.f32 %v514_v54, %v1562_v58  ;;  %v516_v61 = vpop.f32.mrb[13].mxu0  ;;  %v576_v62 = vpack.c.bf16 %v566_v56, %v564_v55 }
 0x11c   : > { %v517_v63 = vadd.f32 %v516_v61, %v1564_v59  ;;  %v518_v0 = vpop.f32.mrb[14].mxu0 }
 0x11d   : > { %v551_v1 = vmul.f32 0.01, %v515_v60  ;;  %v519_v2 = vadd.f32 %v518_v0, %v1562_v58  ;;  %v520_v3 = vpop.f32.mrb[15].mxu0  ;;  %762 = vmatprep.mubr.bf16.mxu1 %v576_v62  ;;  %vm535_vm12 = vcmp.ge.f32.partialorder %v515_v60, 0.0  ;;  %v790_v58 = vpop.permute.xlu0 %789 }
 0x11e   : > { %v552_v4 = vmul.f32 0.01, %v517_v63  ;;  %v521_v5 = vadd.f32 %v520_v3, %v1564_v59  ;;  %763 = vmatmul.mubr.bf16.gmra.mrb[8].mxu1 %v575_v57  ;;  %vm536_vm13 = vcmp.ge.f32.partialorder %v517_v63, 0.0  ;;  %v1083_v59 = vld [vmem:[%s1699_s5] ss:$0 sm:$0xff]  ;;  %v815_v57 = vpop.permute.xlu1 %814 }
 0x11f   : > { %vm537_vm14 = vcmp.ge.f32.partialorder %v519_v2, 0.0  ;;  %v553_v6 = vmul.f32 0.01, %v519_v2  ;;  %v567_v8 = vsel %vm535_vm12, %v515_v60, %v551_v1 }
 0x120   : > { %vm538_vm15 = vcmp.ge.f32.partialorder %v521_v5, 0.0  ;;  %v554_v7 = vmul.f32 0.01, %v521_v5  ;;  %v568_v10 = vsel %vm536_vm13, %v517_v63, %v552_v4 }
 0x121   : > { %v569_v9 = vsel %vm537_vm14, %v519_v2, %v553_v6  ;;  %v795_v21 = vpop.permute.xlu0 %794 }
 0x122   : > { %v570_v11 = vsel %vm538_vm15, %v521_v5, %v554_v7  ;;  %v577_v12 = vpack.c.bf16 %v569_v9, %v567_v8  ;;  %v825_v7 = vpop.permute.xlu1 %824 }
 0x123   : > { %v578_v13 = vpack.c.bf16 %v570_v11, %v568_v10 }
 0x125   : > { %770 = vmatprep.mubr.bf16.mxu1 %v578_v13  ;;  %v810_v54 = vpop.permute.xlu0 %809 }
 0x126   : > { %771 = vmatmul.mubr.bf16.gmra.mrb[12].mxu1 %v577_v12 }
 0x1e1   : > { %v1124_v14 = vpop.f32.mrb[0].mxu1 }
 0x1e2   : > { %v1125_v15 = vpop.f32.mrb[1].mxu1 }
 0x1e3   : > { %v1126_v16 = vadd.f32 %v1125_v15, %v1124_v14  ;;  %v1127_v17 = vpop.f32.mrb[2].mxu1 }
 0x1e4   : > { %v1128_v18 = vpop.f32.mrb[3].mxu1 }
 0x1e5   : > { %v749_v19 = vadd.f32 %v1126_v16, %v1083_v59  ;;  %v1129_v20 = vadd.f32 %v1128_v18, %v1127_v17 }
 0x1e7   : > { %v827_v22 = vmul.f32 %v790_v58, %v749_v19  ;;  %v752_v23 = vadd.f32 %v1129_v20, %v1083_v59 }
 0x1e9   : > { %v828_v24 = vmul.f32 %v795_v21, %v752_v23  ;;  %v1130_v25 = vpop.f32.mrb[4].mxu1  ;;  %v835_v28 = vadd.f32 %v827_v22, %v1499_v26 }
 0x1ea   : > { %v1131_v32 = vpop.f32.mrb[5].mxu1 }
 0x1eb   : > { %v1132_v35 = vadd.f32 %v1131_v32, %v1130_v25  ;;  %v1133_v38 = vpop.f32.mrb[6].mxu1  ;;  %843 = vadd.xlane.f32.xlu0 %v835_v28  ;;  %v836_v39 = vadd.f32 %v828_v24, %v1502_v27 }
 0x1ec   : > { %v1134_v40 = vpop.f32.mrb[7].mxu1 }
 0x1ed   : > { %v757_v41 = vadd.f32 %v1132_v35, %v1083_v59  ;;  %v1135_v42 = vadd.f32 %v1134_v40, %v1133_v38  ;;  %845 = vadd.xlane.f32.xlu1 %v836_v39 }
 0x1ef   : > { %v760_v43 = vadd.f32 %v1135_v42, %v1083_v59  ;;  %v829_v44 = vmul.f32 %v800_v29, %v757_v41 }
 0x1f1   : > { %v1136_v46 = vpop.f32.mrb[8].mxu1  ;;  %v837_v47 = vadd.f32 %v829_v44, %v1511_v30  ;;  %v830_v48 = vmul.f32 %v805_v45, %v760_v43 }
 0x1f2   : > { %v1137_v49 = vpop.f32.mrb[9].mxu1 }
 0x1f3   : > { %v1138_v26 = vadd.f32 %v1137_v49, %v1136_v46  ;;  %v1139_v50 = vpop.f32.mrb[10].mxu1  ;;  %847 = vadd.xlane.f32.xlu0 %v837_v47  ;;  %v838_v27 = vadd.f32 %v830_v48, %v1514_v31  ;;  %v820_v31 = vpop.permute.xlu0 %819 }
 0x1f4   : > { %v1140_v51 = vpop.f32.mrb[11].mxu1 }
 0x1f5   : > { %v765_v52 = vadd.f32 %v1138_v26, %v1083_v59  ;;  %v1141_v53 = vadd.f32 %v1140_v51, %v1139_v50 }
 0x1f7   : > { %v768_v55 = vadd.f32 %v1141_v53, %v1083_v59  ;;  %849 = vadd.xlane.f32.xlu0 %v838_v27  ;;  %v831_v56 = vmul.f32 %v810_v54, %v765_v52 }
 0x1f9   : > { %v1142_v60 = vpop.f32.mrb[12].mxu1  ;;  %v839_v61 = vadd.f32 %v831_v56, %v1520_v33  ;;  %v832_v62 = vmul.f32 %v815_v57, %v768_v55  ;;  %v1100_v55 = vld [vmem:[%s1700_s6] ss:$0 sm:$0xff] }
 0x1fa   : > { %v1143_v30 = vpop.f32.mrb[13].mxu1 }
 0x1fb   : > { %v1144_v63 = vadd.f32 %v1143_v30, %v1142_v60  ;;  %v1145_v0 = vpop.f32.mrb[14].mxu1  ;;  %851 = vadd.xlane.f32.xlu1 %v839_v61  ;;  %v840_v1 = vadd.f32 %v832_v62, %v1523_v34  ;;  %v1101_v62 = vld [vmem:[%s1701_s7] ss:$0 sm:$0xff] }
 0x1fc   : > { %v1146_v2 = vpop.f32.mrb[15].mxu1 }
 0x1fd   : > { %v773_v3 = vadd.f32 %v1144_v63, %v1083_v59  ;;  %v1147_v4 = vadd.f32 %v1146_v2, %v1145_v0  ;;  %853 = vadd.xlane.f32.xlu0 %v840_v1 }
 0x1ff   : > { %v776_v5 = vadd.f32 %v1147_v4, %v1083_v59  ;;  %v833_v6 = vmul.f32 %v820_v31, %v773_v3 }
 0x201   : > { %v841_v8 = vadd.f32 %v833_v6, %v1529_v36  ;;  %v834_v9 = vmul.f32 %v825_v7, %v776_v5 }
 0x203   : > { %855 = vadd.xlane.f32.xlu1 %v841_v8  ;;  %v842_v33 = vadd.f32 %v834_v9, %v1532_v37 }
 0x205   : > { %857 = vadd.xlane.f32.xlu0 %v842_v33 }
 0x278   : > { %v844_v10 = vpop.xlane.xlu0 %843 }
 0x279   : > { %v860_v11 = vmul.f32 0.0078125, %v844_v10 }
 0x27a   : > { %v846_v12 = vpop.xlane.xlu1 %845 }
 0x27b   : > { %v868_v13 = vsub.f32 %v835_v28, %v860_v11  ;;  %v861_v34 = vmul.f32 0.0078125, %v846_v12 }
 0x27d   : > { %v869_v58 = vsub.f32 %v836_v39, %v861_v34  ;;  %v876_v14 = vmul.f32 %v868_v13, %v868_v13 }
 0x27f   : > { %884 = vadd.xlane.f32.xlu1 %v876_v14  ;;  %v877_v15 = vmul.f32 %v869_v58, %v869_v58 }
 0x280   : > { %v848_v16 = vpop.xlane.xlu0 %847 }
 0x281   : > { %v862_v59 = vmul.f32 0.0078125, %v848_v16  ;;  %886 = vadd.xlane.f32.xlu0 %v877_v15 }
 0x283   : > { %v1593_v17 = vsub.f32 %v837_v47, %v862_v59 }
 0x284   : > { %v850_v36 = vpop.xlane.xlu0 %849 }
 0x285   : > { %v863_v18 = vmul.f32 0.0078125, %v850_v36  ;;  %v878_v37 = vmul.f32 %v1593_v17, %v1593_v17 }
 0x287   : > { %v1597_v19 = vsub.f32 %v838_v27, %v863_v18  ;;  %888 = vadd.xlane.f32.xlu1 %v878_v37 }
 0x288   : > { %v852_v20 = vpop.xlane.xlu1 %851 }
 0x289   : > { %v864_v21 = vmul.f32 0.0078125, %v852_v20  ;;  %v879_v22 = vmul.f32 %v1597_v19, %v1597_v19 }
 0x28a   : > { %v854_v23 = vpop.xlane.xlu0 %853 }
 0x28b   : > { %v1601_v24 = vsub.f32 %v839_v61, %v864_v21  ;;  %v865_v25 = vmul.f32 0.0078125, %v854_v23  ;;  %890 = vadd.xlane.f32.xlu0 %v879_v22 }
 0x28d   : > { %v1603_v28 = vsub.f32 %v840_v1, %v865_v25  ;;  %v880_v29 = vmul.f32 %v1601_v24, %v1601_v24 }
 0x28f   : > { %892 = vadd.xlane.f32.xlu1 %v880_v29  ;;  %v881_v32 = vmul.f32 %v1603_v28, %v1603_v28 }
 0x290   : > { %v856_v35 = vpop.xlane.xlu1 %855 }
 0x291   : > { %v866_v38 = vmul.f32 0.0078125, %v856_v35  ;;  %894 = vadd.xlane.f32.xlu0 %v881_v32 }
 0x292   : > { %v858_v39 = vpop.xlane.xlu0 %857 }
 0x293   : > { %v1609_v40 = vsub.f32 %v841_v8, %v866_v38  ;;  %v867_v41 = vmul.f32 0.0078125, %v858_v39 }
 0x295   : > { %v1611_v42 = vsub.f32 %v842_v33, %v867_v41  ;;  %v882_v43 = vmul.f32 %v1609_v40, %v1609_v40 }
 0x297   : > { %896 = vadd.xlane.f32.xlu1 %v882_v43  ;;  %v883_v44 = vmul.f32 %v1611_v42, %v1611_v42 }
 0x299   : > { %898 = vadd.xlane.f32.xlu0 %v883_v44 }
 0x30c   : > { %v885_v45 = vpop.xlane.xlu1 %884 }
 0x30d   : > { %v900_v46 = vmul.f32 0.0078125, %v885_v45 }
 0x30e   : > { %v887_v47 = vpop.xlane.xlu0 %886 }
 0x30f   : > { %v908_v48 = vadd.f32 1e-05, %v900_v46  ;;  %v901_v49 = vmul.f32 0.0078125, %v887_v47 }
 0x311   : > { %1232 = vrsqrt.f32 %v908_v48  ;;  %v909_v26 = vadd.f32 1e-05, %v901_v49 }
 0x313   : > { %1234 = vrsqrt.f32 %v909_v26 }
 0x314   : > { %v889_v50 = vpop.xlane.xlu1 %888 }
 0x315   : > { %v902_v51 = vmul.f32 0.0078125, %v889_v50 }
 0x317   : > { %v910_v52 = vadd.f32 1e-05, %v902_v51 }
 0x318   : > { %v891_v53 = vpop.xlane.xlu0 %890 }
 0x319   : > { %1236 = vrsqrt.f32 %v910_v52  ;;  %v903_v27 = vmul.f32 0.0078125, %v891_v53 }
 0x31b   : > { %v1233_v54 = vpop.eup %1232  ;;  %v911_v56 = vadd.f32 1e-05, %v903_v27 }
 0x31c   : > { %v924_v57 = vmul.f32 %v1233_v54, %v868_v13  ;;  %v893_v60 = vpop.xlane.xlu1 %892 }
 0x31d   : > { %v1235_v61 = vpop.eup %1234  ;;  %1238 = vrsqrt.f32 %v911_v56  ;;  %v904_v30 = vmul.f32 0.0078125, %v893_v60 }
 0x31e   : > { %v939_v63 = vmul.f32 %v1100_v55, %v924_v57  ;;  %v925_v0 = vmul.f32 %v1235_v61, %v869_v58  ;;  %v895_v1 = vpop.xlane.xlu0 %894 }
 0x31f   : > { %v912_v2 = vadd.f32 1e-05, %v904_v30  ;;  %v905_v3 = vmul.f32 0.0078125, %v895_v1 }
 0x320   : > { %v954_v4 = vadd.f32 %v1101_v62, %v939_v63  ;;  %v940_v31 = vmul.f32 %v1100_v55, %v925_v0 }
 0x321   : > { %1240 = vrsqrt.f32 %v912_v2  ;;  %v913_v5 = vadd.f32 1e-05, %v905_v3 }
 0x322   : > { %962 = vst [vmem:[%s1626_s17] sm:$0xff] %v954_v4  ;;  %v955_v6 = vadd.f32 %v1101_v62, %v940_v31 }
 0x323   : > { %v1237_v7 = vpop.eup %1236  ;;  %1242 = vrsqrt.f32 %v913_v5 }
 0x324   : > { %963 = vst [vmem:[%s1626_s17 + $0x8] sm:$0xff] %v955_v6  ;;  %v926_v8 = vmul.f32 %v1237_v7, %v1593_v17  ;;  %v897_v9 = vpop.xlane.xlu1 %896 }
 0x325   : > { %v906_v33 = vmul.f32 0.0078125, %v897_v9 }
 0x326   : > { %v941_v10 = vmul.f32 %v1100_v55, %v926_v8  ;;  %v899_v11 = vpop.xlane.xlu0 %898 }
 0x327   : > { %v1239_v12 = vpop.eup %1238  ;;  %v914_v13 = vadd.f32 1e-05, %v906_v33  ;;  %v907_v34 = vmul.f32 0.0078125, %v899_v11 }
 0x328   : > { %v956_v58 = vadd.f32 %v1101_v62, %v941_v10  ;;  %v927_v14 = vmul.f32 %v1239_v12, %v1597_v19 }
 0x329   : > { %1244 = vrsqrt.f32 %v914_v13  ;;  %v915_v15 = vadd.f32 1e-05, %v907_v34 }
 0x32a   : > { %964 = vst [vmem:[%s1626_s17 + $0x10] sm:$0xff] %v956_v58  ;;  %v942_v16 = vmul.f32 %v1100_v55, %v927_v14 }
 0x32b   : > { %v1241_v59 = vpop.eup %1240  ;;  %1246 = vrsqrt.f32 %v915_v15 }
 0x32c   : > { %v957_v17 = vadd.f32 %v1101_v62, %v942_v16  ;;  %v928_v36 = vmul.f32 %v1241_v59, %v1601_v24 }
 0x32d   : > { %v1243_v18 = vpop.eup %1242 }
 0x32e   : > { %965 = vst [vmem:[%s1626_s17 + $0x18] sm:$0xff] %v957_v17  ;;  %v943_v37 = vmul.f32 %v1100_v55, %v928_v36  ;;  %v929_v20 = vmul.f32 %v1243_v18, %v1603_v28 }
 0x330   : > { %v958_v21 = vadd.f32 %v1101_v62, %v943_v37  ;;  %v944_v19 = vmul.f32 %v1100_v55, %v929_v20 }
 0x332   : > { %966 = vst [vmem:[%s1626_s17 + $0x20] sm:$0xff] %v958_v21  ;;  %v959_v22 = vadd.f32 %v1101_v62, %v944_v19 }
 0x333   : > { %v1245_v23 = vpop.eup %1244 }
 0x334   : > { %967 = vst [vmem:[%s1626_s17 + $0x28] sm:$0xff] %v959_v22  ;;  %v930_v25 = vmul.f32 %v1245_v23, %v1609_v40 }
 0x335   : > { %v1247_v29 = vpop.eup %1246 }
 0x336   : > { %v945_v24 = vmul.f32 %v1100_v55, %v930_v25  ;;  %v931_v32 = vmul.f32 %v1247_v29, %v1611_v42 }
 0x338   : > { %v960_v35 = vadd.f32 %v1101_v62, %v945_v24  ;;  %v946_v28 = vmul.f32 %v1100_v55, %v931_v32 }
 0x33a   : > { %968 = vst [vmem:[%s1626_s17 + $0x30] sm:$0xff] %v960_v35  ;;  %v961_v38 = vadd.f32 %v1101_v62, %v946_v28 }
 0x33c   : > { %969 = vst [vmem:[%s1626_s17 + $0x38] sm:$0xff] %v961_v38 }
 0x33d   : > { %1261 = shalt.err (!%p1258_p3)
}
 0x33e   : > { %s1262_s25 = scalar_lea.hbm %s1645_s20, 1024  ;;  %s1266_s17 = scalar_lea.hbm %s1702_s8, 8192 }
 0x33f   : > { %p1263_p4 = scmp.ne.s32.totalorder %s1645_s20, %s1262_s25  ;;  %p1267_p9 = scmp.lt.u32.totalorder %s1645_s20, %s1702_s8 }
 0x340   : > { %p1268_p10 = scmp.lt.u32.totalorder %s1266_s17, %s1262_s25  ;;  %p1270_p12 = scmp.lt.u32.totalorder %s1262_s25, %s1645_s20 }
 0x341   : > { %p1264_p7 = pnand %p1263_p4, %p1399_p5 }
 0x342   : > { %p1269_p11 = por %p1268_p10, %p1267_p9 }
 0x343   : > { %p1265_p8 = pneg %p1264_p7 }
 0x344   : > { %p1271_p13 = por %p1270_p12, %p1269_p11 }
 0x346   : > { %p1272_p0 = pnand %p1271_p13, %p1265_p8 }
 0x348   : > { %1275 = shalt.err (!%p1272_p0)
}
 0x349   : > { %s1314_s23 = smov 128   ;;  %s1315_s9 = smov 8  }
 0x34a   : > { %1148 = dma.vmem_to_hbm [thread:$0]  (%p1399_p5), %s1647_s19, 1024, %s1645_s20, %s1653_s21, %s1314_s23, %s1314_s23, %s1315_s9  }
 0x34b PF: > { %p1154_p1 = scmp.ge.s32.totalorder %s1310_s30, 2  ;;  %s999_s22 = sand.u32 1, %s1298_s27  }
 0x34c   : > { %s1000_s24 = scalar_lea.sflag [#allocation3], %s999_s22 }
 0x34d   : > { %p1151_p2 = pnand %p1154_p1, %p1403_p6 }
 0x34f   : > { %1293 = dma.done.wait (!%p1151_p2), %s1000_s24, 1024  }
 0x350   : > { %1295 = vsyncadd (!%p1151_p2), %s1000_s24, 4294966272  ;;  %p18_p3 = scmp.ge.s32.totalorder %s1386_s11, 10   ;;  %s1705_s27 = smov %s1302_s28 }
 0x351   : > { %s1706_s28 = smov %s1306_s29  ;;  %s1707_s29 = smov %s1397_s14 }
 0x352   : > { %s1708_s30 = smov %s1386_s11  ;;  %20 = sbr.rel (!%p18_p3) target bundleno = 3 (0x3), region = 90 }
 0x359   :  { %1005 = vsyncpa [#allocation3], 1 }
 0x35a   :  { %1007 = vsyncpa [#allocation3 + $0x1], 1 }

</bundles_post_ra>
